<compile_context>
chip_gen: v5e
topology: v5e:2x2
jax: 0.10.0
libtpu: 0.0.40
codegen_flags: <defaults>
</compile_context>

<pallas_src>
import functools
import math

import jax
import jax.numpy as jnp
from jax.experimental import pallas as pl
from jax.experimental.pallas import tpu as pltpu

_LANE = 128      # lane width: last dim of every tile padded to this
_SUBLANE = 8     # sublane width: batch tiles are multiples of this


def _round_up(n, m):
    return ((n + m - 1) // m) * m


# ---------------------------------------------------------------------------
# Fused kernel: refs = (x, W0, b0, W1, b1, ..., W_{L-1}, b_{L-1}, out)
# ---------------------------------------------------------------------------
def _mlp_fused_kernel(*refs, n_layers, tanh_flags):
    x_ref = refs[0]
    o_ref = refs[1 + 2 * n_layers]

    h = x_ref[...]                                   # (TB, D0_pad) f32
    for k in range(n_layers):                        # static unroll
        w = refs[1 + 2 * k][...]                     # (Din_pad, Dout_pad)
        b = refs[2 + 2 * k][...]                     # (1, Dout_pad)
        # MXU matmul with f32 accumulation; bias on VPU, tanh on EUP, f32.
        h = jnp.dot(h, w, preferred_element_type=jnp.float32) + b
        if tanh_flags[k]:
            h = jnp.tanh(h)
    o_ref[...] = h.astype(o_ref.dtype)


# ---------------------------------------------------------------------------
# Parameter init (mirrors MLP.weights_init) and lane-dense padding
# ---------------------------------------------------------------------------
def xavier_uniform(key, fan_in, fan_out, gain):
    # Matches nn.init.xavier_uniform_ on a (fan_out, fan_in) weight; we store
    # its transpose (fan_in, fan_out), which does not change the distribution.
    bound = gain * math.sqrt(6.0 / (fan_in + fan_out))
    return jax.random.uniform(
        key, (fan_in, fan_out), dtype=jnp.float32, minval=-bound, maxval=bound
    )


def init_mlp_params(key, input_dim, output_dim, size_list):
    """Deterministic parameter init mirroring MLP.weights_init."""
    sizes = [input_dim] + size_list + [output_dim]
    n_layers = len(sizes) - 1
    tanh_gain = 5.0 / 3.0  # nn.init.calculate_gain('tanh')
    params = []
    keys = jax.random.split(key, n_layers)
    for k in range(n_layers):
        fan_in, fan_out = sizes[k], sizes[k + 1]
        is_last = k == n_layers - 1
        gain = 1.0 if is_last else tanh_gain
        w = xavier_uniform(keys[k], fan_in, fan_out, gain)
        b = jnp.zeros((fan_out,), dtype=jnp.float32)
        params.append((w, b, not is_last))  # (W, b, apply_tanh)
    return params


def pad_params_lane_dense(params):
    """Zero-pad every (W, b) so feature dims are multiples of 128 (lane dense).

    Done once, outside the per-call path (also hoists the bias reshape to 2-D).
    """
    padded = []
    for w, b, apply_tanh in params:
        fin, fout = w.shape
        fin_p, fout_p = _round_up(fin, _LANE), _round_up(fout, _LANE)
        w_p = jnp.pad(w.astype(jnp.float32), ((0, fin_p - fin), (0, fout_p - fout)))
        b_p = jnp.pad(b.astype(jnp.float32), (0, fout_p - fout)).reshape(1, fout_p)
        padded.append((w_p, b_p, apply_tanh))
    return padded


# ---------------------------------------------------------------------------
# Forward: one pallas_call for the whole MLP, batch-tiled "parallel" grid
# ---------------------------------------------------------------------------
def mlp_forward(x, padded_params, in_dim, out_dim, *, batch_tile=512):
    # TODO(synk): `preproc` is an arbitrary user callable; not translated.
    batch = x.shape[0]
    in_dim_p = padded_params[0][0].shape[0]
    out_dim_p = padded_params[-1][0].shape[1]
    n_layers = len(padded_params)
    tanh_flags = tuple(p[2] for p in padded_params)

    # Pad batch to a sublane multiple and pick a batch tile (multiple of 8).
    b_pad = _round_up(batch, _SUBLANE)
    tb = min(b_pad, batch_tile)
    b_pad = _round_up(b_pad, tb)

    x_p = jnp.zeros((b_pad, in_dim_p), jnp.float32)
    x_p = x_p.at[:batch, :in_dim].set(x.astype(jnp.float32))

    in_specs = [pl.BlockSpec((tb, in_dim_p), lambda i: (i, 0))]
    flat_inputs = [x_p]
    for w_p, b_p, _ in padded_params:
        # Constant index_map -> block never changes -> stays resident in VMEM.
        in_specs.append(pl.BlockSpec(w_p.shape, lambda i: (0, 0)))
        in_specs.append(pl.BlockSpec(b_p.shape, lambda i: (0, 0)))
        flat_inputs.append(w_p)
        flat_inputs.append(b_p)

    kernel = functools.partial(
        _mlp_fused_kernel, n_layers=n_layers, tanh_flags=tanh_flags
    )

    out_p = pl.pallas_call(
        kernel,
        out_shape=jax.ShapeDtypeStruct((b_pad, out_dim_p), jnp.float32),
        grid=(b_pad // tb,),
        in_specs=in_specs,
        out_specs=pl.BlockSpec((tb, out_dim_p), lambda i: (i, 0)),
        compiler_params=pltpu.CompilerParams(
            dimension_semantics=("parallel",),          # shard batch across TCs
            vmem_limit_bytes=32 * 1024 * 1024,          # safe on v7x's 64 MiB VMEM
        ),
    )(*flat_inputs)

    # Slice the real rows/columns back out of the lane-padded output.
    return out_p[:batch, :out_dim]


def _ref_forward(x, params):
    """Pure-JAX reference (unpadded params) for correctness checking."""
    h = x
    for w, b, apply_tanh in params:
        h = h @ w + b
        if apply_tanh:
            h = jnp.tanh(h)
    return h


if __name__ == "__main__":
    key = jax.random.PRNGKey(0)
    k_params, k_x1, k_x2 = jax.random.split(key, 3)

    input_dim = 4      # input_shape = (4,)
    output_dim = 2     # output_shape = (2,)
    size_list = [32, 32]

    params = init_mlp_params(k_params, input_dim, output_dim, size_list)
    padded_params = pad_params_lane_dense(params)

    fwd = jax.jit(
        lambda xx: mlp_forward(xx, padded_params, input_dim, output_dim)
    )

    # Main check: sublane-aligned batch.
    batch = 8
    x = jax.random.normal(k_x1, (batch, input_dim), dtype=jnp.float32)
    y = fwd(x)
    jax.block_until_ready(y)
    assert y.shape == (batch, output_dim)
    assert jnp.allclose(y, _ref_forward(x, params), atol=1e-5, rtol=1e-5)

    # Secondary check: batch not a multiple of 8 (exercises row padding path).
    batch2 = 5
    x2 = jax.random.normal(k_x2, (batch2, input_dim), dtype=jnp.float32)
    y2 = jax.jit(
        lambda xx: mlp_forward(xx, padded_params, input_dim, output_dim)
    )(x2)
    jax.block_until_ready(y2)
    assert y2.shape == (batch2, output_dim)
    assert jnp.allclose(y2, _ref_forward(x2, params), atol=1e-5, rtol=1e-5)

    print("KERNEL_OK")
</pallas_src>

<mosaic_0001>
module attributes {stable_mosaic.version = 11 : i64} {
  func.func @_mlp_fused_kernel(%arg0: i32, %arg1: memref<8x128xf32, #tpu.memory_space<vmem>>, %arg2: memref<128x128xf32, #tpu.memory_space<vmem>>, %arg3: memref<1x128xf32, #tpu.memory_space<vmem>>, %arg4: memref<128x128xf32, #tpu.memory_space<vmem>>, %arg5: memref<1x128xf32, #tpu.memory_space<vmem>>, %arg6: memref<128x128xf32, #tpu.memory_space<vmem>>, %arg7: memref<1x128xf32, #tpu.memory_space<vmem>>, %arg8: memref<8x128xf32, #tpu.memory_space<vmem>>) attributes {dimension_semantics = [#tpu.dimension_semantics<parallel>], iteration_bounds = array<i64: 1>, scalar_prefetch = 0 : i64, scratch_operands = 0 : i64, tpu.core_type = #tpu.core_type<tc>, window_params = [{transform_indices = @transform_0, window_bounds = array<i64: 8, 128>}, {pipeline_mode = #tpu.pipeline_mode<synchronous>, transform_indices = @transform_1, window_bounds = array<i64: 128, 128>}, {pipeline_mode = #tpu.pipeline_mode<synchronous>, transform_indices = @transform_2, window_bounds = array<i64: 1, 128>}, {pipeline_mode = #tpu.pipeline_mode<synchronous>, transform_indices = @transform_3, window_bounds = array<i64: 128, 128>}, {pipeline_mode = #tpu.pipeline_mode<synchronous>, transform_indices = @transform_4, window_bounds = array<i64: 1, 128>}, {pipeline_mode = #tpu.pipeline_mode<synchronous>, transform_indices = @transform_5, window_bounds = array<i64: 128, 128>}, {pipeline_mode = #tpu.pipeline_mode<synchronous>, transform_indices = @transform_6, window_bounds = array<i64: 1, 128>}, {transform_indices = @transform_7, window_bounds = array<i64: 8, 128>}]} {
    %c0 = arith.constant 0 : index
    %c0_0 = arith.constant 0 : index
    %0 = vector.load %arg1[%c0, %c0_0] : memref<8x128xf32, #tpu.memory_space<vmem>>, vector<8x128xf32>
    %c0_1 = arith.constant 0 : index
    %c0_2 = arith.constant 0 : index
    %1 = vector.load %arg2[%c0_1, %c0_2] : memref<128x128xf32, #tpu.memory_space<vmem>>, vector<128x128xf32>
    %c0_3 = arith.constant 0 : index
    %c0_4 = arith.constant 0 : index
    %2 = vector.load %arg3[%c0_3, %c0_4] : memref<1x128xf32, #tpu.memory_space<vmem>>, vector<1x128xf32>
    %cst = arith.constant dense<0.000000e+00> : vector<8x128xf32>
    %3 = tpu.matmul %0, %1, %cst {dimension_numbers = #tpu.dot_dimension_numbers<[1], [0], [0], [1], [0, 0, 1, 1], [], []>} : vector<8x128xf32>, vector<128x128xf32>, vector<8x128xf32> -> vector<8x128xf32>
    %4 = vector.broadcast %2 : vector<1x128xf32> to vector<8x128xf32>
    %5 = arith.addf %3, %4 : vector<8x128xf32>
    %6 = math.tanh %5 : vector<8x128xf32>
    %c0_5 = arith.constant 0 : index
    %c0_6 = arith.constant 0 : index
    %7 = vector.load %arg4[%c0_5, %c0_6] : memref<128x128xf32, #tpu.memory_space<vmem>>, vector<128x128xf32>
    %c0_7 = arith.constant 0 : index
    %c0_8 = arith.constant 0 : index
    %8 = vector.load %arg5[%c0_7, %c0_8] : memref<1x128xf32, #tpu.memory_space<vmem>>, vector<1x128xf32>
    %cst_9 = arith.constant dense<0.000000e+00> : vector<8x128xf32>
    %9 = tpu.matmul %6, %7, %cst_9 {dimension_numbers = #tpu.dot_dimension_numbers<[1], [0], [0], [1], [0, 0, 1, 1], [], []>} : vector<8x128xf32>, vector<128x128xf32>, vector<8x128xf32> -> vector<8x128xf32>
    %10 = vector.broadcast %8 : vector<1x128xf32> to vector<8x128xf32>
    %11 = arith.addf %9, %10 : vector<8x128xf32>
    %12 = math.tanh %11 : vector<8x128xf32>
    %c0_10 = arith.constant 0 : index
    %c0_11 = arith.constant 0 : index
    %13 = vector.load %arg6[%c0_10, %c0_11] : memref<128x128xf32, #tpu.memory_space<vmem>>, vector<128x128xf32>
    %c0_12 = arith.constant 0 : index
    %c0_13 = arith.constant 0 : index
    %14 = vector.load %arg7[%c0_12, %c0_13] : memref<1x128xf32, #tpu.memory_space<vmem>>, vector<1x128xf32>
    %cst_14 = arith.constant dense<0.000000e+00> : vector<8x128xf32>
    %15 = tpu.matmul %12, %13, %cst_14 {dimension_numbers = #tpu.dot_dimension_numbers<[1], [0], [0], [1], [0, 0, 1, 1], [], []>} : vector<8x128xf32>, vector<128x128xf32>, vector<8x128xf32> -> vector<8x128xf32>
    %16 = vector.broadcast %14 : vector<1x128xf32> to vector<8x128xf32>
    %17 = arith.addf %15, %16 : vector<8x128xf32>
    %c0_15 = arith.constant 0 : index
    %c0_16 = arith.constant 0 : index
    %18 = vector.load %arg8[%c0_15, %c0_16] : memref<8x128xf32, #tpu.memory_space<vmem>>, vector<8x128xf32>
    tpu.vector_store %arg8[%c0_15, %c0_16], %17 {strides = array<i32>} : memref<8x128xf32, #tpu.memory_space<vmem>>, vector<8x128xf32>,
    return
  }
  func.func @transform_0(%arg0: i32) -> (i32, i32) {
    %c0_i32 = arith.constant 0 : i32
    %c0_i32_0 = arith.constant 0 : i32
    return %arg0, %c0_i32 : i32, i32
  }
  func.func @transform_1(%arg0: i32) -> (i32, i32) {
    %c0_i32 = arith.constant 0 : i32
    %c0_i32_0 = arith.constant 0 : i32
    %c0_i32_1 = arith.constant 0 : i32
    return %c0_i32, %c0_i32_0 : i32, i32
  }
  func.func @transform_2(%arg0: i32) -> (i32, i32) {
    %c0_i32 = arith.constant 0 : i32
    %c0_i32_0 = arith.constant 0 : i32
    %c0_i32_1 = arith.constant 0 : i32
    return %c0_i32, %c0_i32_0 : i32, i32
  }
  func.func @transform_3(%arg0: i32) -> (i32, i32) {
    %c0_i32 = arith.constant 0 : i32
    %c0_i32_0 = arith.constant 0 : i32
    %c0_i32_1 = arith.constant 0 : i32
    return %c0_i32, %c0_i32_0 : i32, i32
  }
  func.func @transform_4(%arg0: i32) -> (i32, i32) {
    %c0_i32 = arith.constant 0 : i32
    %c0_i32_0 = arith.constant 0 : i32
    %c0_i32_1 = arith.constant 0 : i32
    return %c0_i32, %c0_i32_0 : i32, i32
  }
  func.func @transform_5(%arg0: i32) -> (i32, i32) {
    %c0_i32 = arith.constant 0 : i32
    %c0_i32_0 = arith.constant 0 : i32
    %c0_i32_1 = arith.constant 0 : i32
    return %c0_i32, %c0_i32_0 : i32, i32
  }
  func.func @transform_6(%arg0: i32) -> (i32, i32) {
    %c0_i32 = arith.constant 0 : i32
    %c0_i32_0 = arith.constant 0 : i32
    %c0_i32_1 = arith.constant 0 : i32
    return %c0_i32, %c0_i32_0 : i32, i32
  }
  func.func @transform_7(%arg0: i32) -> (i32, i32) {
    %c0_i32 = arith.constant 0 : i32
    %c0_i32_0 = arith.constant 0 : i32
    return %arg0, %c0_i32 : i32, i32
  }
}

</mosaic_0001>

<bundles_post_ra>
// kernel: _lambda_.1
= control target key start
LH: loop header
LB: loop body
LE: loop exit
PB: predicated region body
PF: predicated region fallthrough
CT: control target
= control target key end

     0   :  { %12 = vsyncpa [#allocation3], 0  ;;  %s360_s0 = inlined_call_operand.vmem [shape: f32[8,128], index: 0, kind: input, shape index: {}]   ;;  %s361_s1 = inlined_call_operand.hbm [shape: f32[128,128], index: 1, kind: input, shape index: {}]   ;;  %s362_s2 = inlined_call_operand.vmem [shape: f32[1,128], index: 2, kind: input, shape index: {}, may-alias: {2,4,6}]   ;;  %s363_s3 = inlined_call_operand.hbm [shape: f32[128,128], index: 3, kind: input, shape index: {}]   ;;  %s364_s4 = inlined_call_operand.vmem [shape: f32[1,128], index: 4, kind: input, shape index: {}, may-alias: {2,4,6}]   ;;  %s365_s5 = inlined_call_operand.hbm [shape: f32[128,128], index: 5, kind: input, shape index: {}]   ;;  %s366_s6 = inlined_call_operand.vmem [shape: f32[1,128], index: 6, kind: input, shape index: {}, may-alias: {2,4,6}]   ;;  %s367_s7 = inlined_call_operand.vmem [shape: f32[8,128], index: 7, kind: output, shape index: {}]  }
   0x1   :  { %13 = vsyncpa [#allocation5], 0  ;;  %s35_s26 = sshll.u32 %s363_s3, 4  ;;  %s291_s27 = smov [#allocation4]   ;;  %s36_s26 = int_to_ptr.hbm [resolvable:$true] %s35_s26 }
   0x2   :  { %s37_s28 = sshll.u32 %s291_s27, 4  ;;  %s20_s8 = sshll.u32 %s361_s1, 4  ;;  %s38_s28 = int_to_ptr.vmem [resolvable:$true] %s37_s28  ;;  %s21_s8 = int_to_ptr.hbm [resolvable:$true] %s20_s8 }
   0x3   :  { %s292_s9 = smov 128   ;;  %s293_s10 = smov 8  }
   0x4   :  { %43 = dma.hbm_to_vmem [thread:$0]  %s36_s26, 2048, %s38_s28, [#allocation5], %s292_s9, %s292_s9, %s293_s10  }
   0x5   :  { %s294_s11 = smov [#allocation2]   ;;  %s50_s15 = sshll.u32 %s365_s5, 4  ;;  %s51_s15 = int_to_ptr.hbm [resolvable:$true] %s50_s15 }
   0x6   :  { %s22_s12 = sshll.u32 %s294_s11, 4  ;;  %s295_s3 = smov [#allocation6]   ;;  %s23_s12 = int_to_ptr.vmem [resolvable:$true] %s22_s12 }
   0x7   :  { %28 = dma.hbm_to_vmem [thread:$0]  %s21_s8, 2048, %s23_s12, [#allocation3], %s292_s9, %s292_s9, %s293_s10  }
   0x8   :  { %s52_s16 = sshll.u32 %s295_s3, 4  ;;  %s53_s16 = int_to_ptr.vmem [resolvable:$true] %s52_s16 }
   0x9   :  { %58 = dma.hbm_to_vmem [thread:$0]  %s51_s15, 2048, %s53_s16, [#allocation5], %s292_s9, %s292_s9, %s293_s10  }
   0xa   :  { %287 = dma.done.wait [#allocation3], 2048  }
   0xb   :  { %288 = vsyncadd [#allocation3], 4294965248 }
   0xc   :  { %289 = dma.done.wait [#allocation5], 4096  }
   0xd   :  { %290 = vsyncadd [#allocation5], 4294963200  ;;  %v89_v0 = vld [vmem:[#allocation2 + $0x78] sm:$0xff]  ;;  %v88_v1 = vld [vmem:[#allocation2 + $0x70] sm:$0xff] }
   0xe   :  { %94 = vmatpush.msra.mxu0 %v89_v0  ;;  %v87_v2 = vld [vmem:[#allocation2 + $0x68] sm:$0xff]  ;;  %v86_v3 = vld [vmem:[#allocation2 + $0x60] sm:$0xff]  ;;  %v130_v4 = vld [vmem:[#allocation4 + $0x78] sm:$0xff] }
   0xf   :  { %v85_v5 = vld [vmem:[#allocation2 + $0x58] sm:$0xff]  ;;  %135 = vmatpush.msra.mxu1 %v130_v4  ;;  %v129_v6 = vld [vmem:[#allocation4 + $0x70] sm:$0xff]  ;;  %v128_v7 = vld [vmem:[#allocation4 + $0x68] sm:$0xff] }
  0x10   :  { %95 = vmatpush.msra.mxu0 %v88_v1  ;;  %v84_v8 = vld [vmem:[#allocation2 + $0x50] sm:$0xff]  ;;  %v127_v9 = vld [vmem:[#allocation4 + $0x60] sm:$0xff]  ;;  %v83_v10 = vld [vmem:[#allocation2 + $0x48] sm:$0xff] }
  0x11   :  { %136 = vmatpush.msra.mxu1 %v129_v6  ;;  %v126_v11 = vld [vmem:[#allocation4 + $0x58] sm:$0xff]  ;;  %v82_v12 = vld [vmem:[#allocation2 + $0x40] sm:$0xff]  ;;  %v125_v13 = vld [vmem:[#allocation4 + $0x50] sm:$0xff] }
  0x12   :  { %96 = vmatpush.msra.mxu0 %v87_v2  ;;  %v81_v14 = vld [vmem:[#allocation2 + $0x38] sm:$0xff]  ;;  %v124_v15 = vld [vmem:[#allocation4 + $0x48] sm:$0xff]  ;;  %v80_v16 = vld [vmem:[#allocation2 + $0x30] sm:$0xff] }
  0x13   :  { %137 = vmatpush.msra.mxu1 %v128_v7  ;;  %v123_v17 = vld [vmem:[#allocation4 + $0x40] sm:$0xff]  ;;  %v79_v18 = vld [vmem:[#allocation2 + $0x28] sm:$0xff]  ;;  %v122_v19 = vld [vmem:[#allocation4 + $0x38] sm:$0xff] }
  0x14   :  { %97 = vmatpush.msra.mxu0 %v86_v3  ;;  %v78_v20 = vld [vmem:[#allocation2 + $0x20] sm:$0xff]  ;;  %v121_v21 = vld [vmem:[#allocation4 + $0x30] sm:$0xff]  ;;  %v77_v22 = vld [vmem:[#allocation2 + $0x18] sm:$0xff] }
  0x15   :  { %138 = vmatpush.msra.mxu1 %v127_v9  ;;  %v120_v23 = vld [vmem:[#allocation4 + $0x28] sm:$0xff]  ;;  %v76_v24 = vld [vmem:[#allocation2 + $0x10] sm:$0xff]  ;;  %v74_v26 = vld [vmem:[#allocation2] sm:$0xff] }
  0x16   :  { %98 = vmatpush.msra.mxu0 %v85_v5  ;;  %v75_v25 = vld [vmem:[#allocation2 + $0x8] sm:$0xff]  ;;  %v73_v27 = vld [vmem:[%s360_s0] sm:$0xff]  ;;  %v118_v29 = vld [vmem:[#allocation4 + $0x18] sm:$0xff] }
  0x17   :  { %139 = vmatpush.msra.mxu1 %v126_v11  ;;  %v119_v28 = vld [vmem:[#allocation4 + $0x20] sm:$0xff]  ;;  %v117_v30 = vld [vmem:[#allocation4 + $0x10] sm:$0xff]  ;;  %v116_v31 = vld [vmem:[#allocation4 + $0x8] sm:$0xff] }
  0x18   :  { %99 = vmatpush.msra.mxu0 %v84_v8  ;;  %v115_v32 = vld [vmem:[#allocation4] sm:$0xff]  ;;  %v171_v33 = vld [vmem:[#allocation6 + $0x78] sm:$0xff]  ;;  %v170_v34 = vld [vmem:[#allocation6 + $0x70] sm:$0xff] }
  0x19   :  { %140 = vmatpush.msra.mxu1 %v125_v13  ;;  %176 = vmatpush.msra.mxu2 %v171_v33  ;;  %v169_v35 = vld [vmem:[#allocation6 + $0x68] sm:$0xff]  ;;  %v168_v36 = vld [vmem:[#allocation6 + $0x60] sm:$0xff]  ;;  %v167_v37 = vld [vmem:[#allocation6 + $0x58] sm:$0xff] }
  0x1a   :  { %100 = vmatpush.msra.mxu0 %v83_v10  ;;  %v166_v38 = vld [vmem:[#allocation6 + $0x50] sm:$0xff]  ;;  %v165_v39 = vld [vmem:[#allocation6 + $0x48] sm:$0xff]  ;;  %v164_v40 = vld [vmem:[#allocation6 + $0x40] sm:$0xff] }
  0x1b   :  { %141 = vmatpush.msra.mxu1 %v124_v15  ;;  %177 = vmatpush.msra.mxu2 %v170_v34  ;;  %v163_v41 = vld [vmem:[#allocation6 + $0x38] sm:$0xff]  ;;  %v162_v42 = vld [vmem:[#allocation6 + $0x30] sm:$0xff]  ;;  %v161_v43 = vld [vmem:[#allocation6 + $0x28] sm:$0xff] }
  0x1c   :  { %101 = vmatpush.msra.mxu0 %v82_v12  ;;  %v208_v44 = vld [vmem:[%s362_s2] ss:$0 sm:$0xff]  ;;  %v159_v49 = vld [vmem:[#allocation6 + $0x18] sm:$0xff]  ;;  %v158_v50 = vld [vmem:[#allocation6 + $0x10] sm:$0xff] }
  0x1d   :  { %142 = vmatpush.msra.mxu1 %v123_v17  ;;  %178 = vmatpush.msra.mxu2 %v169_v35  ;;  %v160_v48 = vld [vmem:[#allocation6 + $0x20] sm:$0xff]  ;;  %v157_v51 = vld [vmem:[#allocation6 + $0x8] sm:$0xff] }
  0x1e   :  { %102 = vmatpush.msra.mxu0 %v81_v14  ;;  %v156_v52 = vld [vmem:[#allocation6] sm:$0xff] }
  0x1f   :  { %143 = vmatpush.msra.mxu1 %v122_v19  ;;  %179 = vmatpush.msra.mxu2 %v168_v36  ;;  %v209_v53 = vld [vmem:[%s364_s4] ss:$0 sm:$0xff] }
  0x20   :  { %103 = vmatpush.msra.mxu0 %v80_v16  ;;  %v210_v57 = vld [vmem:[%s366_s6] ss:$0 sm:$0xff] }
  0x21   :  { %144 = vmatpush.msra.mxu1 %v121_v21  ;;  %180 = vmatpush.msra.mxu2 %v167_v37 }
  0x22   :  { %104 = vmatpush.msra.mxu0 %v79_v18 }
  0x23   :  { %145 = vmatpush.msra.mxu1 %v120_v23  ;;  %181 = vmatpush.msra.mxu2 %v166_v38 }
  0x24   :  { %105 = vmatpush.msra.mxu0 %v78_v20 }
  0x25   :  { %146 = vmatpush.msra.mxu1 %v119_v28  ;;  %182 = vmatpush.msra.mxu2 %v165_v39 }
  0x26   :  { %106 = vmatpush.msra.mxu0 %v77_v22 }
  0x27   :  { %147 = vmatpush.msra.mxu1 %v118_v29  ;;  %183 = vmatpush.msra.mxu2 %v164_v40 }
  0x28   :  { %107 = vmatpush.msra.mxu0 %v76_v24 }
  0x29   :  { %148 = vmatpush.msra.mxu1 %v117_v30  ;;  %184 = vmatpush.msra.mxu2 %v163_v41 }
  0x2a   :  { %108 = vmatpush.msra.mxu0 %v75_v25 }
  0x2b   :  { %149 = vmatpush.msra.mxu1 %v116_v31  ;;  %185 = vmatpush.msra.mxu2 %v162_v42 }
  0x2c   :  { %109 = vmatpush.msra.mxu0 %v74_v26 }
  0x2d   :  { %110 = vmatmul.f32.vlgmr.msra.gmra.mxu0 %v73_v27  ;;  %150 = vmatpush.msra.mxu1 %v115_v32 }
  0x2e   :  { %186 = vmatpush.msra.mxu2 %v161_v43 }
  0x30   :  { %187 = vmatpush.msra.mxu2 %v160_v48 }
  0x32   :  { %188 = vmatpush.msra.mxu2 %v159_v49 }
  0x34   :  { %189 = vmatpush.msra.mxu2 %v158_v50 }
  0x36   :  { %190 = vmatpush.msra.mxu2 %v157_v51 }
  0x38   :  { %191 = vmatpush.msra.mxu2 %v156_v52 }
  0xaa   :  { %v111_v45 = vpop.f32.mrf.mxu0 }
  0xab   :  { %v112_v46 = vadd.f32 %v208_v44, %v111_v45 }
  0xad   :  { %211 = vtanh.f32 %v112_v46 }
  0xb3   :  { %v212_v47 = vpop.eup %211 }
  0xb4   :  { %151 = vmatmul.f32.vlgmr.msra.gmra.mxu1 %v212_v47 }
 0x131   :  { %v152_v54 = vpop.f32.mrf.mxu1 }
 0x132   :  { %v153_v55 = vadd.f32 %v209_v53, %v152_v54 }
 0x134   :  { %213 = vtanh.f32 %v153_v55 }
 0x13a   :  { %v214_v56 = vpop.eup %213 }
 0x13b   :  { %192 = vmatmul.f32.vlgmr.msra.gmra.mxu2 %v214_v56 }
 0x1be   :  { %v193_v58 = vpop.f32.mrf.mxu2 }
 0x1bf   :  { %v194_v59 = vadd.f32 %v210_v57, %v193_v58 }
 0x1c1   :  { %196 = vst [vmem:[%s367_s7] sm:$0xff] %v194_v59 }
 0x1c2   :  { %201 = vsyncpa [#allocation3], 1 }
 0x1c3   :  { %202 = vsyncpa [#allocation5], 1 }

</bundles_post_ra>
